<compile_context>
chip_gen: v5e
topology: v5e:2x2
jax: 0.10.0
libtpu: 0.0.40
codegen_flags: <defaults>
</compile_context>

<pallas_src>
import jax
import jax.numpy as jnp
from jax import lax
from jax.experimental import pallas as pl
from jax.experimental.pallas import tpu as pltpu

_LANE = 128
_TARGET_X_BYTES_PER_STEP = 2 << 20      # aim for ~2 MiB of x per grid step


def _round_up(x, m):
    return ((x + m - 1) // m) * m


def _fused_head_kernel(x_ref, w_ref, b_ref, out_ref):
    # x: (tile_n, C) input dtype ; w: (C, OUT_PAD) compute dtype (resident)
    # b: (1, OUT_PAD) f32 (resident) ; out: (tile_n, OUT_PAD) f32
    x = x_ref[...]
    if x.dtype != w_ref.dtype:
        x = x.astype(w_ref.dtype)           # in-kernel cast: no extra HBM pass
    acc = jnp.dot(x, w_ref[...], preferred_element_type=jnp.float32)
    out_ref[...] = acc + b_ref[...]         # single fused bias add + lane-dense store


def _vmem_budget_and_limit():
    """Generation-aware VMEM budget (per TensorCore) + explicit scoped limit."""
    try:
        cap = int(pltpu.get_tpu_info().vmem_capacity_bytes)
    except Exception:
        cap = 64 << 20                      # conservative fallback (v7x per-TC VMEM)
    if cap >= (96 << 20):                   # v5e / v6e: 128 MiB physical VMEM
        budget = 48 << 20
    else:                                   # v7x: 64 MiB per TensorCore
        budget = 28 << 20
    limit = min(cap * 3 // 4, budget + (16 << 20))
    return budget, limit


def rcnn_regressor_forward(x, w_cls, b_cls, w_bbox, b_bbox,
                           *, compute_dtype=jnp.bfloat16, max_tile_n=4096):
    """Pallas implementation of RCNNRegressor.forward.

    x: (N, C) or (N, C, 1, 1)
    w_cls: (C, 1), b_cls: (1,), w_bbox: (C, 4*num_classes), b_bbox: (4*num_classes,)
    Returns (scores (N, 1) f32, bbox_deltas (N, 4*num_classes) f32).
    """
    if x.ndim == 4:
        assert x.shape[2] == 1 and x.shape[3] == 1, "spatial dims must be (1, 1)"
    x2d = x.reshape(x.shape[0], -1)          # flatten(start_dim=1)

    n, c = x2d.shape
    out_cls = w_cls.shape[1]
    out_bbox = w_bbox.shape[1]
    out_total = out_cls + out_bbox
    out_pad = _round_up(out_total, _LANE)    # lane-dense output (128 for typical heads)

    x_bytes = x2d.dtype.itemsize
    w_bytes = jnp.dtype(compute_dtype).itemsize

    # --- N handling: pad only to the sublane multiple, never to tile_n ---------
    n_align = 8 if x_bytes >= 4 else 16
    n_pad = _round_up(n, n_align)
    x_in = x2d if n_pad == n else jnp.pad(x2d, ((0, n_pad - n), (0, 0)))

    # --- generation-aware tile sizing over N -----------------------------------
    vmem_budget, vmem_limit = _vmem_budget_and_limit()

    def _footprint(t):
        return (2 * t * c * x_bytes          # x double-buffered
                + 2 * t * out_pad * 4        # out double-buffered
                + 2 * c * out_pad * w_bytes  # resident fused weight (2 bufs)
                + 2 * out_pad * 4)           # resident bias

    target_rows = max(256, -(-_TARGET_X_BYTES_PER_STEP // max(c * x_bytes, 1)))
    tile_n = min(n_pad, target_rows, max_tile_n)
    tile_n = max(n_align, _round_up(tile_n, n_align))
    if n_pad >= 4 * n_align:                 # keep >=2 grid steps -> both v7x TCs busy
        tile_n = min(tile_n, _round_up(pl.cdiv(n_pad, 2), n_align))
    while tile_n > n_align and _footprint(tile_n) > vmem_budget:
        tile_n = max(n_align, _round_up(tile_n // 2, n_align))

    grid = (pl.cdiv(n_pad, tile_n),)         # partial last block is masked by Pallas

    # --- fuse + pad the (tiny) weight / bias once: cls column first, then bbox --
    w = jnp.concatenate([w_cls, w_bbox], axis=1).astype(jnp.float32)
    w = jnp.pad(w, ((0, 0), (0, out_pad - out_total))).astype(compute_dtype)
    b = jnp.concatenate([b_cls, b_bbox]).astype(jnp.float32)
    b = jnp.pad(b, (0, out_pad - out_total)).reshape(1, out_pad)

    cost = pl.CostEstimate(
        flops=2 * n_pad * c * out_pad,
        transcendentals=0,
        bytes_accessed=(n_pad * c * x_bytes
                        + c * out_pad * w_bytes
                        + out_pad * 4
                        + n_pad * out_pad * 4),
    )

    out = pl.pallas_call(
        _fused_head_kernel,
        out_shape=jax.ShapeDtypeStruct((n_pad, out_pad), jnp.float32),
        grid=grid,
        in_specs=[
            pl.BlockSpec((tile_n, c), lambda i: (i, 0)),      # stream x rows, no K pad
            pl.BlockSpec((c, out_pad), lambda i: (0, 0)),     # fused weight resident
            pl.BlockSpec((1, out_pad), lambda i: (0, 0)),     # bias resident
        ],
        out_specs=pl.BlockSpec((tile_n, out_pad), lambda i: (i, 0)),
        compiler_params=pltpu.CompilerParams(
            dimension_semantics=("parallel",),                # v7x 2-TC sharding over N
            vmem_limit_bytes=vmem_limit),
        cost_estimate=cost,
    )(x_in, w, b)

    scores = out[:n, :out_cls]
    bbox_deltas = out[:n, out_cls:out_total]
    return scores, bbox_deltas


def init_params(key, in_channels, num_classes):
    """Mirror the PyTorch init: weight ~ N(0, 0.01), bias = 0 (stored transposed)."""
    k1, k2 = jax.random.split(key)
    w_bbox = 0.01 * jax.random.normal(k1, (in_channels, num_classes * 4), jnp.float32)
    b_bbox = jnp.zeros((num_classes * 4,), jnp.float32)
    w_cls = 0.01 * jax.random.normal(k2, (in_channels, 1), jnp.float32)
    b_cls = jnp.zeros((1,), jnp.float32)
    return w_cls, b_cls, w_bbox, b_bbox


def _ref_linear(x, w, b):
    return jnp.dot(x, w, precision=lax.Precision.HIGHEST) + b


if __name__ == "__main__":
    key = jax.random.PRNGKey(0)
    kx, kp, kx2, kp2 = jax.random.split(key, 4)

    # --- test 1: 4-D pooled RoI features (N, C, 1, 1), default bf16 compute ----
    batch, in_channels, num_classes = 8, 32, 5
    x = jax.random.normal(kx, (batch, in_channels, 1, 1), jnp.float32)
    w_cls, b_cls, w_bbox, b_bbox = init_params(kp, in_channels, num_classes)

    scores, bbox_deltas = rcnn_regressor_forward(x, w_cls, b_cls, w_bbox, b_bbox)
    jax.block_until_ready((scores, bbox_deltas))
    assert scores.shape == (batch, 1)
    assert bbox_deltas.shape == (batch, num_classes * 4)

    x2d = x.reshape(batch, -1)
    xb = x2d.astype(jnp.bfloat16).astype(jnp.float32)
    wcb = w_cls.astype(jnp.bfloat16).astype(jnp.float32)
    wbb = w_bbox.astype(jnp.bfloat16).astype(jnp.float32)
    assert jnp.allclose(scores, _ref_linear(xb, wcb, b_cls), atol=1e-4, rtol=1e-3)
    assert jnp.allclose(bbox_deltas, _ref_linear(xb, wbb, b_bbox), atol=1e-4, rtol=1e-3)
    assert jnp.allclose(scores, _ref_linear(x2d, w_cls, b_cls), atol=1e-2, rtol=1e-2)
    assert jnp.allclose(bbox_deltas, _ref_linear(x2d, w_bbox, b_bbox), atol=1e-2, rtol=1e-2)

    # --- test 2: f32 compute path (closer parity with the f32 PyTorch module) --
    s32, d32 = rcnn_regressor_forward(x, w_cls, b_cls, w_bbox, b_bbox,
                                      compute_dtype=jnp.float32)
    jax.block_until_ready((s32, d32))
    assert jnp.allclose(s32, _ref_linear(x2d, w_cls, b_cls), atol=1e-3, rtol=1e-3)
    assert jnp.allclose(d32, _ref_linear(x2d, w_bbox, b_bbox), atol=1e-3, rtol=1e-3)

    # --- test 3: 2-D input, N not sublane-aligned + multi-step grid ------------
    #     (exercises the jnp.pad row path AND the partial last block path)
    batch2, in_channels2, num_classes2 = 39, 256, 3
    x2 = jax.random.normal(kx2, (batch2, in_channels2), jnp.float32)
    w_cls2, b_cls2, w_bbox2, b_bbox2 = init_params(kp2, in_channels2, num_classes2)
    s2, d2 = rcnn_regressor_forward(x2, w_cls2, b_cls2, w_bbox2, b_bbox2)
    jax.block_until_ready((s2, d2))
    assert s2.shape == (batch2, 1) and d2.shape == (batch2, num_classes2 * 4)
    xb2 = x2.astype(jnp.bfloat16).astype(jnp.float32)
    wcb2 = w_cls2.astype(jnp.bfloat16).astype(jnp.float32)
    wbb2 = w_bbox2.astype(jnp.bfloat16).astype(jnp.float32)
    assert jnp.allclose(s2, _ref_linear(xb2, wcb2, b_cls2), atol=1e-4, rtol=1e-3)
    assert jnp.allclose(d2, _ref_linear(xb2, wbb2, b_bbox2), atol=1e-4, rtol=1e-3)
    assert jnp.allclose(s2, _ref_linear(x2, w_cls2, b_cls2), atol=1e-2, rtol=1e-2)
    assert jnp.allclose(d2, _ref_linear(x2, w_bbox2, b_bbox2), atol=1e-2, rtol=1e-2)

    print("KERNEL_OK")
</pallas_src>

<mosaic_0001>
module attributes {stable_mosaic.version = 11 : i64} {
  func.func @_fused_head_kernel(%arg0: i32, %arg1: memref<8x32xf32, #tpu.memory_space<vmem>>, %arg2: memref<32x128xbf16, #tpu.memory_space<vmem>>, %arg3: memref<1x128xf32, #tpu.memory_space<vmem>>, %arg4: memref<8x128xf32, #tpu.memory_space<vmem>>) attributes {dimension_semantics = [#tpu.dimension_semantics<parallel>], iteration_bounds = array<i64: 1>, scalar_prefetch = 0 : i64, scratch_operands = 0 : i64, tpu.core_type = #tpu.core_type<tc>, window_params = [{transform_indices = @transform_0, window_bounds = array<i64: 8, 32>}, {pipeline_mode = #tpu.pipeline_mode<synchronous>, transform_indices = @transform_1, window_bounds = array<i64: 32, 128>}, {pipeline_mode = #tpu.pipeline_mode<synchronous>, transform_indices = @transform_2, window_bounds = array<i64: 1, 128>}, {transform_indices = @transform_3, window_bounds = array<i64: 8, 128>}]} {
    %c0 = arith.constant 0 : index
    %c0_0 = arith.constant 0 : index
    %0 = vector.load %arg1[%c0, %c0_0] : memref<8x32xf32, #tpu.memory_space<vmem>>, vector<8x32xf32>
    %1 = arith.truncf %0 : vector<8x32xf32> to vector<8x32xbf16>
    %c0_1 = arith.constant 0 : index
    %c0_2 = arith.constant 0 : index
    %2 = vector.load %arg2[%c0_1, %c0_2] : memref<32x128xbf16, #tpu.memory_space<vmem>>, vector<32x128xbf16>
    %cst = arith.constant dense<0.000000e+00> : vector<8x128xf32>
    %3 = tpu.matmul %1, %2, %cst {dimension_numbers = #tpu.dot_dimension_numbers<[1], [0], [0], [1], [0, 0, 1, 1], [], []>} : vector<8x32xbf16>, vector<32x128xbf16>, vector<8x128xf32> -> vector<8x128xf32>
    %c0_3 = arith.constant 0 : index
    %c0_4 = arith.constant 0 : index
    %4 = vector.load %arg3[%c0_3, %c0_4] : memref<1x128xf32, #tpu.memory_space<vmem>>, vector<1x128xf32>
    %5 = vector.broadcast %4 : vector<1x128xf32> to vector<8x128xf32>
    %6 = arith.addf %3, %5 : vector<8x128xf32>
    %c0_5 = arith.constant 0 : index
    %c0_6 = arith.constant 0 : index
    %7 = vector.load %arg4[%c0_5, %c0_6] : memref<8x128xf32, #tpu.memory_space<vmem>>, vector<8x128xf32>
    tpu.vector_store %arg4[%c0_5, %c0_6], %6 {strides = array<i32>} : memref<8x128xf32, #tpu.memory_space<vmem>>, vector<8x128xf32>,
    return
  }
  func.func @transform_0(%arg0: i32) -> (i32, i32) {
    %c0_i32 = arith.constant 0 : i32
    %c0_i32_0 = arith.constant 0 : i32
    return %arg0, %c0_i32 : i32, i32
  }
  func.func @transform_1(%arg0: i32) -> (i32, i32) {
    %c0_i32 = arith.constant 0 : i32
    %c0_i32_0 = arith.constant 0 : i32
    %c0_i32_1 = arith.constant 0 : i32
    return %c0_i32, %c0_i32_0 : i32, i32
  }
  func.func @transform_2(%arg0: i32) -> (i32, i32) {
    %c0_i32 = arith.constant 0 : i32
    %c0_i32_0 = arith.constant 0 : i32
    %c0_i32_1 = arith.constant 0 : i32
    return %c0_i32, %c0_i32_0 : i32, i32
  }
  func.func @transform_3(%arg0: i32) -> (i32, i32) {
    %c0_i32 = arith.constant 0 : i32
    %c0_i32_0 = arith.constant 0 : i32
    return %arg0, %c0_i32 : i32, i32
  }
}

</mosaic_0001>

<bundles_post_ra>
// kernel: tpu_custom_call.1
= control target key start
LH: loop header
LB: loop body
LE: loop exit
PB: predicated region body
PF: predicated region fallthrough
CT: control target
= control target key end

     0   :  { %8 = vsyncpa [#allocation3], 0  ;;  %s236_s0 = inlined_call_operand.hbm [shape: f32[8,32], index: 0, kind: input, shape index: {}]   ;;  %s237_s1 = inlined_call_operand.hbm [shape: bf16[32,128], index: 1, kind: input, shape index: {}]   ;;  %s238_s2 = inlined_call_operand.vmem [shape: f32[1,128], index: 2, kind: input, shape index: {}]   ;;  %s239_s3 = inlined_call_operand.hbm [shape: f32[8,128], index: 3, kind: output, shape index: {}]  }
   0x1   :  { %9 = vsyncpa [#allocation6], 0 }
   0x2   :  { %10 = vsyncpa [#allocation4], 0  ;;  %s16_s14 = sshll.u32 %s236_s0, 4  ;;  %s199_s15 = smov [#allocation2]   ;;  %s17_s14 = int_to_ptr.hbm [resolvable:$true] %s16_s14 }
   0x3   :  { %s18_s16 = sshll.u32 %s199_s15, 4  ;;  %s26_s19 = sshll.u32 %s237_s1, 4  ;;  %s19_s16 = int_to_ptr.vmem [resolvable:$true] %s18_s16  ;;  %s27_s19 = int_to_ptr.hbm [resolvable:$true] %s26_s19 }
   0x4   :  { %21 = dma.hbm_to_vmem [thread:$0]  %s17_s14, 128, %s19_s16, [#allocation3]  }
   0x5   :  { %s200_s20 = smov [#allocation5]   ;;  %s201_s22 = smov 64  }
   0x6   :  { %s28_s21 = sshll.u32 %s200_s20, 4  ;;  %s202_s23 = smov 4   ;;  %s29_s21 = int_to_ptr.vmem [resolvable:$true] %s28_s21 }
   0x7   :  { %34 = dma.hbm_to_vmem [thread:$0]  %s27_s19, 256, %s29_s21, [#allocation6], %s201_s22, %s201_s22, %s202_s23  }
   0x8   :  { %193 = dma.done.wait [#allocation3], 128  }
   0x9   :  { %194 = vsyncadd [#allocation3], 4294967168 }
   0xa   :  { %195 = dma.done.wait [#allocation6], 256  }
   0xb   :  { %196 = vsyncadd [#allocation6], 4294967040  ;;  %v114_v0 = vld [vmem:[#allocation5 + $0x8] sm:$0xff]  ;;  %v113_v1 = vld [vmem:[#allocation5] sm:$0xff]  ;;  %vm68_vm0 = vcmask 261120   ;;  %s203_s24 = smov [#allocation7]  }
   0xc   :  { %78 = vmatpush.bf16.msra.mxu0 %v114_v0  ;;  %v46_v2 = vld [vmem:[#allocation2] sm:$0xff]  ;;  %s91_s25 = sshll.u32 %s203_s24, 4  ;;  %s93_s28 = sshll.u32 %s239_s3, 4  ;;  %s92_s25 = int_to_ptr.vmem [resolvable:$true] %s91_s25  ;;  %s94_s28 = int_to_ptr.hbm [resolvable:$true] %s93_s28 }
   0xd   :  { %v47_v3 = vpack.c.bf16 %v46_v2, %v46_v2  ;;  %v120_v4 = vld [vmem:[%s238_s2] ss:$0 sm:$0xff] }
  0x10   :  { %79 = vmatpush.bf16.msra.mxu0 %v113_v1 }
  0x13   :  { %112 = vmatmul.msk.bf16.vlgmr.msra.gmra.mxu0 %vm68_vm0, %v47_v3 }
  0x90   :  { %v81_v5 = vpop.f32.mrf.mxu0 }
  0x91   :  { %v82_v6 = vadd.f32 %v120_v4, %v81_v5 }
  0x93   :  { %85 = vst [vmem:[#allocation7] sm:$0xff] %v82_v6 }
  0x94   :  { %96 = dma.vmem_to_hbm [thread:$0]  %s92_s25, 128, %s94_s28, [#allocation4]  }
  0x98   :  { %v83_v7 = vpop.f32.mrf.mxu0 }
  0x99   :  { %197 = dma.done.wait [#allocation4], 128  }
  0x9a   :  { %198 = vsyncadd [#allocation4], 4294967168 }
  0x9b   :  { %101 = vsyncpa [#allocation3], 1 }
  0x9c   :  { %102 = vsyncpa [#allocation6], 1 }
  0x9d   :  { %103 = vsyncpa [#allocation4], 1 }

</bundles_post_ra>
